<compile_context>
chip_gen: v5e
topology: v5e:2x2
jax: 0.10.0
libtpu: 0.0.40
codegen_flags: <defaults>
</compile_context>

<pallas_src>
import functools

import jax
import jax.numpy as jnp
from jax import lax
from jax.experimental import pallas as pl
from jax.experimental.pallas import tpu as pltpu


def _round_up(x, m):
    return ((x + m - 1) // m) * m


# ----------------------------------------------------------------------------
# Kernel
# ----------------------------------------------------------------------------
def actor_critic_kernel(x_ref, w1_ref, b1_ref, w2_ref, b2_ref, out_ref, *, n_actions):
    # x:  (TB, D_pad)  bf16      w1: (D_pad, 2H) bf16      b1: (1, 2H)   f32
    # w2: (2H, OUT_W)  bf16      b2: (1, OUT_W)  f32       out:(TB, OUT_W) f32
    x = x_ref[...]

    # ---- fused first layer: critic-hidden and actor-hidden in one MXU op ----
    h = jnp.dot(x, w1_ref[...], preferred_element_type=jnp.float32)    # (TB, 2H) f32
    h = jnp.maximum(h + b1_ref[...], 0.0)                              # bias + relu (f32)

    # ---- fused heads: block-diagonal second layer -> (TB, OUT_W) ----
    y = jnp.dot(h.astype(w2_ref.dtype), w2_ref[...],
                preferred_element_type=jnp.float32) + b2_ref[...]
    # cols [0:A) -> actor logits, col A -> critic value, remaining lanes -> 0-weight pad

    lane = lax.broadcasted_iota(jnp.int32, y.shape, 1)
    is_policy = lane < n_actions

    # numerically-stable softmax restricted to the policy lanes
    logits = jnp.where(is_policy, y, jnp.float32(-1e30))
    m = jnp.max(logits, axis=1, keepdims=True)
    e = jnp.exp(logits - m)                                # padded lanes underflow to 0
    denom = jnp.sum(e, axis=1, keepdims=True)
    probs = e * pl.reciprocal(denom, approx=False)

    out = jnp.where(is_policy, probs,
                    jnp.where(lane == n_actions, y, jnp.float32(0.0)))
    out_ref[...] = out


# ----------------------------------------------------------------------------
# Wrapper
# ----------------------------------------------------------------------------
def actor_critic_forward(state, packed, n_actions, block_b=512):
    """state: (B, D) f32.  packed: dict from pack_params().  Returns (policy, value)."""
    B, D = state.shape
    w1, b1, w2, b2 = packed["w1"], packed["b1"], packed["w2"], packed["b2"]
    D_pad, H2 = w1.shape            # (padded input dim, 2*hidden)
    out_w = w2.shape[1]             # lane-dense output width (multiple of 128)

    # batch tile: multiple of 8 sublanes, capped at block_b
    TB = min(block_b, _round_up(B, 8))
    B_pad = _round_up(B, TB)

    x = jnp.pad(state, ((0, B_pad - B), (0, D_pad - D))).astype(jnp.bfloat16)

    kernel = functools.partial(actor_critic_kernel, n_actions=n_actions)

    out = pl.pallas_call(
        kernel,
        out_shape=jax.ShapeDtypeStruct((B_pad, out_w), jnp.float32),
        grid=(B_pad // TB,),
        in_specs=[
            pl.BlockSpec((TB, D_pad), lambda i: (i, 0)),   # state tile streams over batch
            pl.BlockSpec((D_pad, H2), lambda i: (0, 0)),   # W1 resident in VMEM
            pl.BlockSpec((1, H2),     lambda i: (0, 0)),   # b1 resident
            pl.BlockSpec((H2, out_w), lambda i: (0, 0)),   # W2 resident
            pl.BlockSpec((1, out_w),  lambda i: (0, 0)),   # b2 resident
        ],
        out_specs=pl.BlockSpec((TB, out_w), lambda i: (i, 0)),
        compiler_params=pltpu.CompilerParams(
            dimension_semantics=("parallel",),             # batch axis -> 2 TCs on v7x
            vmem_limit_bytes=32 << 20,                     # safe on v7x's 64 MiB / TC
        ),
    )(x, w1, b1, w2, b2)

    policy = out[:B, :n_actions]
    value = out[:B, n_actions:n_actions + 1]
    return policy, value


# ----------------------------------------------------------------------------
# Parameter init / packing
# ----------------------------------------------------------------------------
def init_params(key, input_dims, n_actions, hidden=512):
    """nn.Linear-style init U(-1/sqrt(fan_in), 1/sqrt(fan_in)).

    Weights stored pre-transposed as (in_features, out_features); biases as (1, out).
    """
    ks = jax.random.split(key, 8)

    def lin(kw, kb, fan_in, fan_out):
        bound = 1.0 / jnp.sqrt(jnp.float32(fan_in))
        w = jax.random.uniform(kw, (fan_in, fan_out), jnp.float32, -bound, bound)
        b = jax.random.uniform(kb, (1, fan_out), jnp.float32, -bound, bound)
        return w, b

    cw1, cb1 = lin(ks[0], ks[1], input_dims, hidden)
    cw3, cb3 = lin(ks[2], ks[3], hidden, 1)
    aw1, ab1 = lin(ks[4], ks[5], input_dims, hidden)
    aw3, ab3 = lin(ks[6], ks[7], hidden, n_actions)
    return dict(cw1=cw1, cb1=cb1, cw3=cw3, cb3=cb3,
                aw1=aw1, ab1=ab1, aw3=aw3, ab3=ab3)


def pack_params(params, input_dims, n_actions):
    """Pack the four Linear layers into two fused, padded, bf16 weight matrices."""
    hidden = params["cw1"].shape[1]
    D_pad = _round_up(max(input_dims, 1), 128)
    out_w = _round_up(n_actions + 1, 128)

    # fused first layer: cols [0:H) critic, [H:2H) actor; contraction dim padded to 128
    w1 = jnp.concatenate([params["cw1"], params["aw1"]], axis=1)        # (D, 2H)
    w1 = jnp.pad(w1, ((0, D_pad - input_dims), (0, 0)))                 # (D_pad, 2H)
    b1 = jnp.concatenate([params["cb1"], params["ab1"]], axis=1)        # (1, 2H)

    # fused second layer: block-diagonal, lane-dense output layout
    #   cols [0:A) <- actor_w3 acting on the actor-hidden rows
    #   col  A     <- critic_w3 acting on the critic-hidden rows
    w2 = jnp.zeros((2 * hidden, out_w), jnp.float32)
    w2 = w2.at[hidden:, :n_actions].set(params["aw3"])
    w2 = w2.at[:hidden, n_actions:n_actions + 1].set(params["cw3"])
    b2 = jnp.zeros((1, out_w), jnp.float32)
    b2 = b2.at[:, :n_actions].set(params["ab3"])
    b2 = b2.at[:, n_actions:n_actions + 1].set(params["cb3"])

    return dict(w1=w1.astype(jnp.bfloat16), b1=b1,          # biases stay f32
                w2=w2.astype(jnp.bfloat16), b2=b2)


def reference_forward(state, p):
    """Pure-JAX f32 reference matching the PyTorch forward()."""
    ch = jnp.maximum(state @ p["cw1"] + p["cb1"], 0.0)
    value = ch @ p["cw3"] + p["cb3"]
    ah = jnp.maximum(state @ p["aw1"] + p["ab1"], 0.0)
    logits = ah @ p["aw3"] + p["ab3"]
    policy = jax.nn.softmax(logits, axis=1)
    return policy, value


# TODO(synk): remember / clear_memory / calc_R / calc_loss / choose_action / save are
# host-side training bookkeeping with no kernel equivalent; only forward() is implemented.

if __name__ == "__main__":
    B, D, A = 8, 32, 4            # batch, input_dims, n_actions (small test shapes)
    key = jax.random.PRNGKey(0)
    k_state, k_params = jax.random.split(key)

    state = jax.random.normal(k_state, (B, D), dtype=jnp.float32)
    params = init_params(k_params, input_dims=D, n_actions=A)
    packed = pack_params(params, input_dims=D, n_actions=A)

    fwd = jax.jit(actor_critic_forward, static_argnames=("n_actions", "block_b"))
    policy, value = fwd(state, packed, n_actions=A)
    policy = jax.block_until_ready(policy)
    value = jax.block_until_ready(value)

    # correctness vs. pure-JAX f32 reference
    # (bf16 matmul operands -> loosened tolerance; softmax normalization stays tight)
    policy_ref, value_ref = reference_forward(state, params)
    assert policy.shape == (B, A) and value.shape == (B, 1)
    assert jnp.allclose(policy, policy_ref, atol=3e-2, rtol=3e-2)
    assert jnp.allclose(value, value_ref, atol=3e-2, rtol=3e-2)
    assert jnp.allclose(jnp.sum(policy, axis=1), 1.0, atol=1e-4)

    print("KERNEL_OK")
</pallas_src>

<mosaic_0001>
module attributes {stable_mosaic.version = 11 : i64} {
  func.func @actor_critic_kernel(%arg0: i32, %arg1: memref<8x128xbf16, #tpu.memory_space<vmem>>, %arg2: memref<128x1024xbf16, #tpu.memory_space<vmem>>, %arg3: memref<1x1024xf32, #tpu.memory_space<vmem>>, %arg4: memref<1024x128xbf16, #tpu.memory_space<vmem>>, %arg5: memref<1x128xf32, #tpu.memory_space<vmem>>, %arg6: memref<8x128xf32, #tpu.memory_space<vmem>>) attributes {dimension_semantics = [#tpu.dimension_semantics<parallel>], iteration_bounds = array<i64: 1>, scalar_prefetch = 0 : i64, scratch_operands = 0 : i64, tpu.core_type = #tpu.core_type<tc>, window_params = [{transform_indices = @transform_0, window_bounds = array<i64: 8, 128>}, {pipeline_mode = #tpu.pipeline_mode<synchronous>, transform_indices = @transform_1, window_bounds = array<i64: 128, 1024>}, {pipeline_mode = #tpu.pipeline_mode<synchronous>, transform_indices = @transform_2, window_bounds = array<i64: 1, 1024>}, {pipeline_mode = #tpu.pipeline_mode<synchronous>, transform_indices = @transform_3, window_bounds = array<i64: 1024, 128>}, {pipeline_mode = #tpu.pipeline_mode<synchronous>, transform_indices = @transform_4, window_bounds = array<i64: 1, 128>}, {transform_indices = @transform_5, window_bounds = array<i64: 8, 128>}]} {
    %c0 = arith.constant 0 : index
    %c0_0 = arith.constant 0 : index
    %0 = vector.load %arg1[%c0, %c0_0] : memref<8x128xbf16, #tpu.memory_space<vmem>>, vector<8x128xbf16>
    %c0_1 = arith.constant 0 : index
    %c0_2 = arith.constant 0 : index
    %1 = vector.load %arg2[%c0_1, %c0_2] : memref<128x1024xbf16, #tpu.memory_space<vmem>>, vector<128x1024xbf16>
    %cst = arith.constant dense<0.000000e+00> : vector<8x1024xf32>
    %2 = tpu.matmul %0, %1, %cst {dimension_numbers = #tpu.dot_dimension_numbers<[1], [0], [0], [1], [0, 0, 1, 1], [], []>} : vector<8x128xbf16>, vector<128x1024xbf16>, vector<8x1024xf32> -> vector<8x1024xf32>
    %c0_3 = arith.constant 0 : index
    %c0_4 = arith.constant 0 : index
    %3 = vector.load %arg3[%c0_3, %c0_4] : memref<1x1024xf32, #tpu.memory_space<vmem>>, vector<1x1024xf32>
    %4 = vector.broadcast %3 : vector<1x1024xf32> to vector<8x1024xf32>
    %5 = arith.addf %2, %4 : vector<8x1024xf32>
    %cst_5 = arith.constant 0.000000e+00 : f32
    %6 = vector.broadcast %cst_5 : f32 to vector<8x1024xf32>
    %7 = arith.maximumf %5, %6 : vector<8x1024xf32>
    %8 = arith.truncf %7 : vector<8x1024xf32> to vector<8x1024xbf16>
    %c0_6 = arith.constant 0 : index
    %c0_7 = arith.constant 0 : index
    %9 = vector.load %arg4[%c0_6, %c0_7] : memref<1024x128xbf16, #tpu.memory_space<vmem>>, vector<1024x128xbf16>
    %cst_8 = arith.constant dense<0.000000e+00> : vector<8x128xf32>
    %10 = tpu.matmul %8, %9, %cst_8 {dimension_numbers = #tpu.dot_dimension_numbers<[1], [0], [0], [1], [0, 0, 1, 1], [], []>} : vector<8x1024xbf16>, vector<1024x128xbf16>, vector<8x128xf32> -> vector<8x128xf32>
    %c0_9 = arith.constant 0 : index
    %c0_10 = arith.constant 0 : index
    %11 = vector.load %arg5[%c0_9, %c0_10] : memref<1x128xf32, #tpu.memory_space<vmem>>, vector<1x128xf32>
    %12 = vector.broadcast %11 : vector<1x128xf32> to vector<8x128xf32>
    %13 = arith.addf %10, %12 : vector<8x128xf32>
    %14 = tpu.iota {dimensions = array<i32: 1>} : vector<8x128xi32>
    %c4_i32 = arith.constant 4 : i32
    %15 = vector.broadcast %c4_i32 : i32 to vector<8x128xi32>
    %16 = arith.cmpi slt, %14, %15 : vector<8x128xi32>
    %cst_11 = arith.constant -1.000000e+30 : f32
    %17 = vector.broadcast %cst_11 : f32 to vector<8x128xf32>
    %18 = arith.select %16, %13, %17 : vector<8x128xi1>, vector<8x128xf32>
    %cst_12 = arith.constant dense<0xFF800000> : vector<8xf32>
    %19 = vector.multi_reduction <maximumf>, %18, %cst_12 [1] : vector<8x128xf32> to vector<8xf32>
    %20 = vector.shape_cast %19 : vector<8xf32> to vector<8x1xf32>
    %21 = vector.broadcast %20 : vector<8x1xf32> to vector<8x128xf32>
    %22 = arith.subf %18, %21 : vector<8x128xf32>
    %23 = math.exp %22 : vector<8x128xf32>
    %cst_13 = arith.constant dense<0.000000e+00> : vector<8xf32>
    %24 = vector.multi_reduction <add>, %23, %cst_13 [1] : vector<8x128xf32> to vector<8xf32>
    %25 = vector.shape_cast %24 : vector<8xf32> to vector<8x1xf32>
    %26 = tpu.reciprocal %25 : vector<8x1xf32> -> vector<8x1xf32>
    %27 = vector.broadcast %26 : vector<8x1xf32> to vector<8x128xf32>
    %28 = arith.mulf %23, %27 : vector<8x128xf32>
    %c4_i32_14 = arith.constant 4 : i32
    %29 = vector.broadcast %c4_i32_14 : i32 to vector<8x128xi32>
    %30 = arith.cmpi eq, %14, %29 : vector<8x128xi32>
    %cst_15 = arith.constant 0.000000e+00 : f32
    %31 = vector.broadcast %cst_15 : f32 to vector<8x128xf32>
    %32 = arith.select %30, %13, %31 : vector<8x128xi1>, vector<8x128xf32>
    %33 = arith.select %16, %28, %32 : vector<8x128xi1>, vector<8x128xf32>
    %c0_16 = arith.constant 0 : index
    %c0_17 = arith.constant 0 : index
    %34 = vector.load %arg6[%c0_16, %c0_17] : memref<8x128xf32, #tpu.memory_space<vmem>>, vector<8x128xf32>
    tpu.vector_store %arg6[%c0_16, %c0_17], %33 {strides = array<i32>} : memref<8x128xf32, #tpu.memory_space<vmem>>, vector<8x128xf32>,
    return
  }
  func.func @transform_0(%arg0: i32) -> (i32, i32) {
    %c0_i32 = arith.constant 0 : i32
    %c0_i32_0 = arith.constant 0 : i32
    return %arg0, %c0_i32 : i32, i32
  }
  func.func @transform_1(%arg0: i32) -> (i32, i32) {
    %c0_i32 = arith.constant 0 : i32
    %c0_i32_0 = arith.constant 0 : i32
    %c0_i32_1 = arith.constant 0 : i32
    return %c0_i32, %c0_i32_0 : i32, i32
  }
  func.func @transform_2(%arg0: i32) -> (i32, i32) {
    %c0_i32 = arith.constant 0 : i32
    %c0_i32_0 = arith.constant 0 : i32
    %c0_i32_1 = arith.constant 0 : i32
    return %c0_i32, %c0_i32_0 : i32, i32
  }
  func.func @transform_3(%arg0: i32) -> (i32, i32) {
    %c0_i32 = arith.constant 0 : i32
    %c0_i32_0 = arith.constant 0 : i32
    %c0_i32_1 = arith.constant 0 : i32
    return %c0_i32, %c0_i32_0 : i32, i32
  }
  func.func @transform_4(%arg0: i32) -> (i32, i32) {
    %c0_i32 = arith.constant 0 : i32
    %c0_i32_0 = arith.constant 0 : i32
    %c0_i32_1 = arith.constant 0 : i32
    return %c0_i32, %c0_i32_0 : i32, i32
  }
  func.func @transform_5(%arg0: i32) -> (i32, i32) {
    %c0_i32 = arith.constant 0 : i32
    %c0_i32_0 = arith.constant 0 : i32
    return %arg0, %c0_i32 : i32, i32
  }
}

</mosaic_0001>

<bundles_post_ra>
// kernel: actor_critic_forward.1
= control target key start
LH: loop header
LB: loop body
LE: loop exit
PB: predicated region body
PF: predicated region fallthrough
CT: control target
= control target key end

     0   :  { %10 = vsyncpa [#allocation3], 0  ;;  %s2010_s0 = inlined_call_operand.vmem [shape: bf16[8,128], index: 0, kind: input, shape index: {}]   ;;  %s2011_s1 = inlined_call_operand.hbm [shape: bf16[128,1024], index: 1, kind: input, shape index: {}]   ;;  %s2012_s2 = inlined_call_operand.vmem [shape: f32[1,1024], index: 2, kind: input, shape index: {}]   ;;  %s2013_s3 = inlined_call_operand.hbm [shape: bf16[1024,128], index: 3, kind: input, shape index: {}]   ;;  %s2014_s4 = inlined_call_operand.vmem [shape: f32[1,128], index: 4, kind: input, shape index: {}]   ;;  %s2015_s5 = inlined_call_operand.vmem [shape: f32[8,128], index: 5, kind: output, shape index: {}]  }
   0x1   :  { %s18_s20 = sshll.u32 %s2011_s1, 4  ;;  %s19_s20 = int_to_ptr.hbm [resolvable:$true] %s18_s20 }
   0x2   :  { %11 = vsyncpa [#allocation5], 0  ;;  %s1934_s21 = smov [#allocation2]   ;;  %s33_s25 = sshll.u32 %s2013_s3, 4  ;;  %s34_s25 = int_to_ptr.hbm [resolvable:$true] %s33_s25 }
   0x3   :  { %s20_s22 = sshll.u32 %s1934_s21, 4  ;;  %s1935_s26 = smov 512   ;;  %s21_s22 = int_to_ptr.vmem [resolvable:$true] %s20_s22 }
   0x4   :  { %s1936_s27 = smov 32   ;;  %s1937_s28 = smov [#allocation4]  }
   0x5   :  { %26 = dma.hbm_to_vmem [thread:$0]  %s19_s20, 8192, %s21_s22, [#allocation3], %s1935_s26, %s1935_s26, %s1936_s27  }
   0x6   :  { %s35_s29 = sshll.u32 %s1937_s28, 4  ;;  %s1938_s30 = smov 64   ;;  %s36_s29 = int_to_ptr.vmem [resolvable:$true] %s35_s29 }
   0x7   :  { %s1939_s6 = smov 4  }
   0x8   :  { %41 = dma.hbm_to_vmem [thread:$0]  %s34_s25, 8192, %s36_s29, [#allocation5], %s1938_s30, %s1938_s30, %s1939_s6  }
   0x9   :  { %1930 = dma.done.wait [#allocation3], 8192  }
   0xa   :  { %1931 = vsyncadd [#allocation3], 4294959104 }
   0xb   :  { %1932 = dma.done.wait [#allocation5], 8192  }
   0xc   :  { %1933 = vsyncadd [#allocation5], 4294959104  ;;  %v1457_v0 = vld [vmem:[#allocation2 + $0x1c0] sm:$0xf]  ;;  %v1465_v2 = vld [vmem:[#allocation2 + $0x1c8] sm:$0xf] }
   0xd   :  { %v1803_v1 = vld [vmem:[#allocation2 + $0x1dc] sm:$0xf0]  ;;  %v1804_v4 = vld [vmem:[#allocation2 + $0x1e4] sm:$0xf0]  ;;  %v1800_v5 = vld [vmem:[#allocation2 + $0x1cc] sm:$0xf] }
   0xe   :  { %v1458_v3 = vor.u32 %v1803_v1, %v1457_v0  ;;  %v1467_v6 = vld [vmem:[#allocation2 + $0x1e8] sm:$0xf0]  ;;  %v1466_v7 = vor.u32 %v1804_v4, %v1465_v2  ;;  %v1799_v9 = vld [vmem:[#allocation2 + $0x1c4] sm:$0xf]  ;;  %v1425_v11 = vld [vmem:[#allocation2 + $0x180] sm:$0xf] }
   0xf   :  { %v1470_v8 = vor.u32 %v1800_v5, %v1467_v6  ;;  %v1459_v10 = vld [vmem:[#allocation2 + $0x1e0] sm:$0xf0]  ;;  %v1795_v13 = vld [vmem:[#allocation2 + $0x19c] sm:$0xf0]  ;;  %v1433_v14 = vld [vmem:[#allocation2 + $0x188] sm:$0xf] }
  0x10   :  { %455 = vmatpush.bf16.msra.mxu0 %v1458_v3  ;;  %v1462_v12 = vor.u32 %v1799_v9, %v1459_v10  ;;  %v1796_v15 = vld [vmem:[#allocation2 + $0x1a4] sm:$0xf0]  ;;  %481 = vmatpush.bf16.msra.mxu2 %v1466_v7  ;;  %v1426_v16 = vor.u32 %v1795_v13, %v1425_v11  ;;  %v1792_v18 = vld [vmem:[#allocation2 + $0x18c] sm:$0xf]  ;;  %v1791_v20 = vld [vmem:[#allocation2 + $0x184] sm:$0xf] }
  0x11   :  { %494 = vmatpush.bf16.msra.mxu3 %v1470_v8  ;;  %v1434_v17 = vor.u32 %v1796_v15, %v1433_v14  ;;  %v1435_v19 = vld [vmem:[#allocation2 + $0x1a8] sm:$0xf0]  ;;  %v1427_v22 = vld [vmem:[#allocation2 + $0x1a0] sm:$0xf0]  ;;  %v1393_v23 = vld [vmem:[#allocation2 + $0x140] sm:$0xf] }
  0x12   :  { %468 = vmatpush.bf16.msra.mxu1 %v1462_v12  ;;  %v1438_v21 = vor.u32 %v1792_v18, %v1435_v19  ;;  %v1787_v24 = vld [vmem:[#allocation2 + $0x15c] sm:$0xf0]  ;;  %v1430_v25 = vor.u32 %v1791_v20, %v1427_v22  ;;  %v1401_v26 = vld [vmem:[#allocation2 + $0x148] sm:$0xf]  ;;  %v1784_v28 = vld [vmem:[#allocation2 + $0x14c] sm:$0xf] }
  0x13   :  { %v1788_v27 = vld [vmem:[#allocation2 + $0x164] sm:$0xf0]  ;;  %v1394_v29 = vor.u32 %v1787_v24, %v1393_v23  ;;  %v1403_v30 = vld [vmem:[#allocation2 + $0x168] sm:$0xf0]  ;;  %v1783_v31 = vld [vmem:[#allocation2 + $0x144] sm:$0xf] }
  0x14   :  { %456 = vmatpush.bf16.msra.mxu0 %v1426_v16  ;;  %v1395_v32 = vld [vmem:[#allocation2 + $0x160] sm:$0xf0]  ;;  %482 = vmatpush.bf16.msra.mxu2 %v1434_v17  ;;  %v1402_v33 = vor.u32 %v1788_v27, %v1401_v26  ;;  %v1406_v34 = vor.u32 %v1784_v28, %v1403_v30  ;;  %v1361_v35 = vld [vmem:[#allocation2 + $0x100] sm:$0xf]  ;;  %v1369_v37 = vld [vmem:[#allocation2 + $0x108] sm:$0xf] }
  0x15   :  { %495 = vmatpush.bf16.msra.mxu3 %v1438_v21  ;;  %v1779_v36 = vld [vmem:[#allocation2 + $0x11c] sm:$0xf0]  ;;  %v1398_v38 = vor.u32 %v1783_v31, %v1395_v32  ;;  %v1780_v39 = vld [vmem:[#allocation2 + $0x124] sm:$0xf0]  ;;  %v1776_v40 = vld [vmem:[#allocation2 + $0x10c] sm:$0xf] }
  0x16   :  { %469 = vmatpush.bf16.msra.mxu1 %v1430_v25  ;;  %v1371_v41 = vld [vmem:[#allocation2 + $0x128] sm:$0xf0]  ;;  %v1775_v42 = vld [vmem:[#allocation2 + $0x104] sm:$0xf]  ;;  %v1362_v44 = vor.u32 %v1779_v36, %v1361_v35  ;;  %v1370_v45 = vor.u32 %v1780_v39, %v1369_v37  ;;  %v1329_v47 = vld [vmem:[#allocation2 + $0xc0] sm:$0xf] }
  0x17   :  { %v1363_v43 = vld [vmem:[#allocation2 + $0x120] sm:$0xf0]  ;;  %v1374_v46 = vor.u32 %v1776_v40, %v1371_v41  ;;  %v1771_v48 = vld [vmem:[#allocation2 + $0xdc] sm:$0xf0]  ;;  %v1337_v49 = vld [vmem:[#allocation2 + $0xc8] sm:$0xf] }
  0x18   :  { %457 = vmatpush.bf16.msra.mxu0 %v1394_v29  ;;  %483 = vmatpush.bf16.msra.mxu2 %v1402_v33  ;;  %v1366_v50 = vor.u32 %v1775_v42, %v1363_v43  ;;  %v1772_v51 = vld [vmem:[#allocation2 + $0xe4] sm:$0xf0]  ;;  %v1768_v52 = vld [vmem:[#allocation2 + $0xcc] sm:$0xf]  ;;  %v1767_v54 = vld [vmem:[#allocation2 + $0xc4] sm:$0xf]  ;;  %v1330_v56 = vor.u32 %v1771_v48, %v1329_v47 }
  0x19   :  { %496 = vmatpush.bf16.msra.mxu3 %v1406_v34  ;;  %v1339_v53 = vld [vmem:[#allocation2 + $0xe8] sm:$0xf0]  ;;  %v1331_v55 = vld [vmem:[#allocation2 + $0xe0] sm:$0xf0]  ;;  %v1338_v57 = vor.u32 %v1772_v51, %v1337_v49  ;;  %v1297_v59 = vld [vmem:[#allocation2 + $0x80] sm:$0xf] }
  0x1a   :  { %470 = vmatpush.bf16.msra.mxu1 %v1398_v38  ;;  %v1342_v58 = vor.u32 %v1768_v52, %v1339_v53  ;;  %v1763_v60 = vld [vmem:[#allocation2 + $0x9c] sm:$0xf0]  ;;  %v1305_v61 = vld [vmem:[#allocation2 + $0x88] sm:$0xf]  ;;  %v1334_v62 = vor.u32 %v1767_v54, %v1331_v55  ;;  %v1760_v0 = vld [vmem:[#allocation2 + $0x8c] sm:$0xf] }
  0x1b   :  { %v1764_v63 = vld [vmem:[#allocation2 + $0xa4] sm:$0xf0]  ;;  %v1307_v1 = vld [vmem:[#allocation2 + $0xa8] sm:$0xf0]  ;;  %v1759_v2 = vld [vmem:[#allocation2 + $0x84] sm:$0xf]  ;;  %v1298_v4 = vor.u32 %v1763_v60, %v1297_v59 }
  0x1c   :  { %458 = vmatpush.bf16.msra.mxu0 %v1362_v44  ;;  %484 = vmatpush.bf16.msra.mxu2 %v1370_v45  ;;  %v1299_v3 = vld [vmem:[#allocation2 + $0xa0] sm:$0xf0]  ;;  %v1306_v5 = vor.u32 %v1764_v63, %v1305_v61  ;;  %v1310_v6 = vor.u32 %v1760_v0, %v1307_v1  ;;  %v1265_v7 = vld [vmem:[#allocation2 + $0x40] sm:$0xf]  ;;  %v1273_v9 = vld [vmem:[#allocation2 + $0x48] sm:$0xf] }
  0x1d   :  { %497 = vmatpush.bf16.msra.mxu3 %v1374_v46  ;;  %v1755_v8 = vld [vmem:[#allocation2 + $0x5c] sm:$0xf0]  ;;  %v1302_v10 = vor.u32 %v1759_v2, %v1299_v3  ;;  %v1756_v11 = vld [vmem:[#allocation2 + $0x64] sm:$0xf0]  ;;  %v1752_v12 = vld [vmem:[#allocation2 + $0x4c] sm:$0xf] }
  0x1e   :  { %471 = vmatpush.bf16.msra.mxu1 %v1366_v50  ;;  %v1275_v13 = vld [vmem:[#allocation2 + $0x68] sm:$0xf0]  ;;  %v1751_v14 = vld [vmem:[#allocation2 + $0x44] sm:$0xf]  ;;  %v1266_v16 = vor.u32 %v1755_v8, %v1265_v7  ;;  %v1233_v17 = vld [vmem:[#allocation2] sm:$0xf]  ;;  %v1274_v19 = vor.u32 %v1756_v11, %v1273_v9 }
  0x1f   :  { %v1267_v15 = vld [vmem:[#allocation2 + $0x60] sm:$0xf0]  ;;  %v1747_v18 = vld [vmem:[#allocation2 + $0x1c] sm:$0xf0]  ;;  %v1278_v20 = vor.u32 %v1752_v12, %v1275_v13  ;;  %v1241_v21 = vld [vmem:[#allocation2 + $0x8] sm:$0xf] }
  0x20   :  { %459 = vmatpush.bf16.msra.mxu0 %v1330_v56  ;;  %485 = vmatpush.bf16.msra.mxu2 %v1338_v57  ;;  %v1748_v22 = vld [vmem:[#allocation2 + $0x24] sm:$0xf0]  ;;  %v1744_v23 = vld [vmem:[#allocation2 + $0xc] sm:$0xf]  ;;  %v1270_v24 = vor.u32 %v1751_v14, %v1267_v15  ;;  %v1473_v26 = vld [vmem:[#allocation2 + $0x1d0] sm:$0xf]  ;;  %v1234_v31 = vor.u32 %v1747_v18, %v1233_v17 }
  0x21   :  { %498 = vmatpush.bf16.msra.mxu3 %v1342_v58  ;;  %v1243_v25 = vld [vmem:[#allocation2 + $0x28] sm:$0xf0]  ;;  %v1805_v27 = vld [vmem:[#allocation2 + $0x1ec] sm:$0xf0]  ;;  %v1481_v28 = vld [vmem:[#allocation2 + $0x1d8] sm:$0xf]  ;;  %v1242_v35 = vor.u32 %v1748_v22, %v1241_v21 }
  0x22   :  { %472 = vmatpush.bf16.msra.mxu1 %v1334_v62  ;;  %v1806_v29 = vld [vmem:[#allocation2 + $0x1f4] sm:$0xf0]  ;;  %v1802_v30 = vld [vmem:[#allocation2 + $0x1dc] sm:$0xf]  ;;  %v1743_v33 = vld [vmem:[#allocation2 + $0x4] sm:$0xf]  ;;  %v1246_v36 = vor.u32 %v1744_v23, %v1243_v25  ;;  %v1474_v39 = vor.u32 %v1805_v27, %v1473_v26 }
  0x23   :  { %v1483_v32 = vld [vmem:[#allocation2 + $0x1f8] sm:$0xf0]  ;;  %v1235_v34 = vld [vmem:[#allocation2 + $0x20] sm:$0xf0]  ;;  %v1801_v37 = vld [vmem:[#allocation2 + $0x1d4] sm:$0xf]  ;;  %v1482_v40 = vor.u32 %v1806_v29, %v1481_v28 }
  0x24   :  { %460 = vmatpush.bf16.msra.mxu0 %v1298_v4  ;;  %486 = vmatpush.bf16.msra.mxu2 %v1306_v5  ;;  %v1475_v38 = vld [vmem:[#allocation2 + $0x1f0] sm:$0xf0]  ;;  %v1441_v41 = vld [vmem:[#allocation2 + $0x190] sm:$0xf]  ;;  %v1486_v42 = vor.u32 %v1802_v30, %v1483_v32  ;;  %v1238_v43 = vor.u32 %v1743_v33, %v1235_v34  ;;  %v1449_v45 = vld [vmem:[#allocation2 + $0x198] sm:$0xf] }
  0x25   :  { %499 = vmatpush.bf16.msra.mxu3 %v1310_v6  ;;  %v1797_v44 = vld [vmem:[#allocation2 + $0x1ac] sm:$0xf0]  ;;  %v1798_v46 = vld [vmem:[#allocation2 + $0x1b4] sm:$0xf0]  ;;  %v1478_v47 = vor.u32 %v1801_v37, %v1475_v38  ;;  %v1794_v48 = vld [vmem:[#allocation2 + $0x19c] sm:$0xf] }
  0x26   :  { %473 = vmatpush.bf16.msra.mxu1 %v1302_v10  ;;  %v1451_v49 = vld [vmem:[#allocation2 + $0x1b8] sm:$0xf0]  ;;  %v1793_v50 = vld [vmem:[#allocation2 + $0x194] sm:$0xf]  ;;  %v1979_v52 = vld [vmem:[%s2010_s0] sm:$0xf]  ;;  %v1442_v53 = vor.u32 %v1797_v44, %v1441_v41  ;;  %v1450_v54 = vor.u32 %v1798_v46, %v1449_v45 }
  0x27   :  { %v1443_v51 = vld [vmem:[#allocation2 + $0x1b0] sm:$0xf0]  ;;  %v1409_v55 = vld [vmem:[#allocation2 + $0x150] sm:$0xf]  ;;  %v1454_v56 = vor.u32 %v1794_v48, %v1451_v49  ;;  %v1417_v58 = vld [vmem:[#allocation2 + $0x158] sm:$0xf] }
  0x28   :  { %461 = vmatpush.bf16.msra.mxu0 %v1266_v16  ;;  %487 = vmatpush.bf16.msra.mxu2 %v1274_v19  ;;  %v1789_v57 = vld [vmem:[#allocation2 + $0x16c] sm:$0xf0]  ;;  %v1790_v59 = vld [vmem:[#allocation2 + $0x174] sm:$0xf0]  ;;  %v1446_v60 = vor.u32 %v1793_v50, %v1443_v51  ;;  %v1786_v61 = vld [vmem:[#allocation2 + $0x15c] sm:$0xf] }
  0x29   :  { %500 = vmatpush.bf16.msra.mxu3 %v1278_v20  ;;  %v1419_v62 = vld [vmem:[#allocation2 + $0x178] sm:$0xf0]  ;;  %v1785_v63 = vld [vmem:[#allocation2 + $0x154] sm:$0xf]  ;;  %v1410_v1 = vor.u32 %v1789_v57, %v1409_v55  ;;  %v1418_v2 = vor.u32 %v1790_v59, %v1417_v58  ;;  %v1377_v3 = vld [vmem:[#allocation2 + $0x110] sm:$0xf] }
  0x2a   :  { %474 = vmatpush.bf16.msra.mxu1 %v1270_v24  ;;  %v1411_v0 = vld [vmem:[#allocation2 + $0x170] sm:$0xf0]  ;;  %v1422_v4 = vor.u32 %v1786_v61, %v1419_v62  ;;  %v1781_v5 = vld [vmem:[#allocation2 + $0x12c] sm:$0xf0]  ;;  %v1385_v6 = vld [vmem:[#allocation2 + $0x118] sm:$0xf] }
  0x2b   :  { %v1782_v7 = vld [vmem:[#allocation2 + $0x134] sm:$0xf0]  ;;  %v1414_v8 = vor.u32 %v1785_v63, %v1411_v0  ;;  %v1778_v9 = vld [vmem:[#allocation2 + $0x11c] sm:$0xf]  ;;  %v1777_v11 = vld [vmem:[#allocation2 + $0x114] sm:$0xf]  ;;  %v1378_v13 = vor.u32 %v1781_v5, %v1377_v3 }
  0x2c   :  { %462 = vmatpush.bf16.msra.mxu0 %v1234_v31  ;;  %488 = vmatpush.bf16.msra.mxu2 %v1242_v35  ;;  %v1387_v10 = vld [vmem:[#allocation2 + $0x138] sm:$0xf0]  ;;  %v1379_v12 = vld [vmem:[#allocation2 + $0x130] sm:$0xf0]  ;;  %v1386_v14 = vor.u32 %v1782_v7, %v1385_v6  ;;  %v1345_v15 = vld [vmem:[#allocation2 + $0xd0] sm:$0xf] }
  0x2d   :  { %501 = vmatpush.bf16.msra.mxu3 %v1246_v36  ;;  %v1390_v16 = vor.u32 %v1778_v9, %v1387_v10  ;;  %v1773_v17 = vld [vmem:[#allocation2 + $0xec] sm:$0xf0]  ;;  %v1353_v18 = vld [vmem:[#allocation2 + $0xd8] sm:$0xf]  ;;  %v1382_v20 = vor.u32 %v1777_v11, %v1379_v12  ;;  %v1770_v21 = vld [vmem:[#allocation2 + $0xdc] sm:$0xf] }
  0x2e   :  { %475 = vmatpush.bf16.msra.mxu1 %v1238_v43  ;;  %v1774_v19 = vld [vmem:[#allocation2 + $0xf4] sm:$0xf0]  ;;  %v1355_v22 = vld [vmem:[#allocation2 + $0xf8] sm:$0xf0]  ;;  %v1769_v23 = vld [vmem:[#allocation2 + $0xd4] sm:$0xf]  ;;  %v1346_v25 = vor.u32 %v1773_v17, %v1345_v15 }
  0x2f   :  { %489 = vmatmul.bf16.vlgmr.msra.gmra.mxu2 %v1979_v52  ;;  %463 = vmatmul.bf16.vlgmr.msra.gmra.mxu0 %v1979_v52  ;;  %v1347_v24 = vld [vmem:[#allocation2 + $0xf0] sm:$0xf0]  ;;  %v1354_v26 = vor.u32 %v1774_v19, %v1353_v18  ;;  %v1313_v27 = vld [vmem:[#allocation2 + $0x90] sm:$0xf]  ;;  %v1358_v28 = vor.u32 %v1770_v21, %v1355_v22  ;;  %v1321_v30 = vld [vmem:[#allocation2 + $0x98] sm:$0xf] }
  0x30   :  { %507 = vmatpush.bf16.msrb.mxu0 %v1474_v39  ;;  %533 = vmatpush.bf16.msrb.mxu2 %v1482_v40  ;;  %v1765_v29 = vld [vmem:[#allocation2 + $0xac] sm:$0xf0]  ;;  %v1766_v31 = vld [vmem:[#allocation2 + $0xb4] sm:$0xf0]  ;;  %v1350_v32 = vor.u32 %v1769_v23, %v1347_v24  ;;  %v1762_v33 = vld [vmem:[#allocation2 + $0x9c] sm:$0xf] }
  0x31   :  { %546 = vmatpush.bf16.msrb.mxu3 %v1486_v42  ;;  %476 = vmatmul.bf16.vlgmr.msra.gmra.mxu1 %v1979_v52  ;;  %v1323_v34 = vld [vmem:[#allocation2 + $0xb8] sm:$0xf0]  ;;  %v1761_v35 = vld [vmem:[#allocation2 + $0x94] sm:$0xf]  ;;  %v1314_v37 = vor.u32 %v1765_v29, %v1313_v27  ;;  %v1322_v38 = vor.u32 %v1766_v31, %v1321_v30  ;;  %v1281_v39 = vld [vmem:[#allocation2 + $0x50] sm:$0xf] }
  0x32   :  { %520 = vmatpush.bf16.msrb.mxu1 %v1478_v47  ;;  %502 = vmatmul.bf16.vlgmr.msra.gmra.mxu3 %v1979_v52  ;;  %v1315_v36 = vld [vmem:[#allocation2 + $0xb0] sm:$0xf0]  ;;  %v1326_v40 = vor.u32 %v1762_v33, %v1323_v34  ;;  %v1757_v41 = vld [vmem:[#allocation2 + $0x6c] sm:$0xf0]  ;;  %v1289_v42 = vld [vmem:[#allocation2 + $0x58] sm:$0xf] }
  0x33   :  { %v1758_v43 = vld [vmem:[#allocation2 + $0x74] sm:$0xf0]  ;;  %v1318_v44 = vor.u32 %v1761_v35, %v1315_v36  ;;  %v1754_v45 = vld [vmem:[#allocation2 + $0x5c] sm:$0xf]  ;;  %v1753_v47 = vld [vmem:[#allocation2 + $0x54] sm:$0xf]  ;;  %v1282_v49 = vor.u32 %v1757_v41, %v1281_v39 }
  0x34   :  { %508 = vmatpush.bf16.msrb.mxu0 %v1442_v53  ;;  %534 = vmatpush.bf16.msrb.mxu2 %v1450_v54  ;;  %v1291_v46 = vld [vmem:[#allocation2 + $0x78] sm:$0xf0]  ;;  %v1283_v48 = vld [vmem:[#allocation2 + $0x70] sm:$0xf0]  ;;  %v1290_v50 = vor.u32 %v1758_v43, %v1289_v42  ;;  %v1249_v51 = vld [vmem:[#allocation2 + $0x10] sm:$0xf] }
  0x35   :  { %547 = vmatpush.bf16.msrb.mxu3 %v1454_v56  ;;  %v1294_v53 = vor.u32 %v1754_v45, %v1291_v46  ;;  %v1749_v54 = vld [vmem:[#allocation2 + $0x2c] sm:$0xf0]  ;;  %v1257_v55 = vld [vmem:[#allocation2 + $0x18] sm:$0xf]  ;;  %v1286_v57 = vor.u32 %v1753_v47, %v1283_v48  ;;  %v1746_v58 = vld [vmem:[#allocation2 + $0x1c] sm:$0xf] }
  0x36   :  { %521 = vmatpush.bf16.msrb.mxu1 %v1446_v60  ;;  %v1750_v56 = vld [vmem:[#allocation2 + $0x34] sm:$0xf0]  ;;  %v1259_v59 = vld [vmem:[#allocation2 + $0x38] sm:$0xf0]  ;;  %v1745_v60 = vld [vmem:[#allocation2 + $0x14] sm:$0xf]  ;;  %v1250_v62 = vor.u32 %v1749_v54, %v1249_v51 }
  0x37   :  { %v1251_v61 = vld [vmem:[#allocation2 + $0x30] sm:$0xf0]  ;;  %v1258_v63 = vor.u32 %v1750_v56, %v1257_v55  ;;  %v1262_v0 = vor.u32 %v1746_v58, %v1259_v59  ;;  %v1830_v3 = vld [vmem:[#allocation4 + $0xb8] sm:$0xff]  ;;  %v1812_v9 = vld [vmem:[#allocation4 + $0x28] sm:$0xff] }
  0x38   :  { %509 = vmatpush.bf16.msrb.mxu0 %v1410_v1  ;;  %535 = vmatpush.bf16.msrb.mxu2 %v1418_v2  ;;  %v1814_v1 = vld [vmem:[#allocation4 + $0x38] sm:$0xff]  ;;  %v1254_v2 = vor.u32 %v1745_v60, %v1251_v61  ;;  %v1813_v5 = vld [vmem:[#allocation4 + $0x30] sm:$0xff]  ;;  %v1828_v11 = vld [vmem:[#allocation4 + $0xa8] sm:$0xff] }
  0x39   :  { %548 = vmatpush.bf16.msrb.mxu3 %v1422_v4  ;;  %v1822_v4 = vld [vmem:[#allocation4 + $0x78] sm:$0xff]  ;;  %v1829_v7 = vld [vmem:[#allocation4 + $0xb0] sm:$0xff]  ;;  %v1820_v12 = vld [vmem:[#allocation4 + $0x68] sm:$0xff] }
  0x3a   :  { %522 = vmatpush.bf16.msrb.mxu1 %v1414_v8  ;;  %v1838_v6 = vld [vmem:[#allocation4 + $0xf8] sm:$0xff]  ;;  %v1821_v8 = vld [vmem:[#allocation4 + $0x70] sm:$0xff]  ;;  %v1827_v15 = vld [vmem:[#allocation4 + $0xa0] sm:$0xff] }
  0x3b   :  { %v1837_v10 = vld [vmem:[#allocation4 + $0xf0] sm:$0xff]  ;;  %v1810_v17 = vld [vmem:[#allocation4 + $0x18] sm:$0xff]  ;;  %v1808_v24 = vld [vmem:[#allocation4 + $0x8] sm:$0xff] }
  0x3c   :  { %510 = vmatpush.bf16.msrb.mxu0 %v1378_v13  ;;  %536 = vmatpush.bf16.msrb.mxu2 %v1386_v14  ;;  %v1811_v13 = vld [vmem:[#allocation4 + $0x20] sm:$0xff]  ;;  %v1836_v14 = vld [vmem:[#allocation4 + $0xe8] sm:$0xff]  ;;  %v1826_v18 = vld [vmem:[#allocation4 + $0x98] sm:$0xff] }
  0x3d   :  { %549 = vmatpush.bf16.msrb.mxu3 %v1390_v16  ;;  %v1819_v16 = vld [vmem:[#allocation4 + $0x60] sm:$0xff]  ;;  %v1818_v19 = vld [vmem:[#allocation4 + $0x58] sm:$0xff]  ;;  %v1825_v22 = vld [vmem:[#allocation4 + $0x90] sm:$0xff] }
  0x3e   :  { %523 = vmatpush.bf16.msrb.mxu1 %v1382_v20  ;;  %v1809_v20 = vld [vmem:[#allocation4 + $0x10] sm:$0xff]  ;;  %v1834_v21 = vld [vmem:[#allocation4 + $0xd8] sm:$0xff]  ;;  %v1816_v27 = vld [vmem:[#allocation4 + $0x48] sm:$0xff] }
  0x3f   :  { %v1817_v23 = vld [vmem:[#allocation4 + $0x50] sm:$0xff]  ;;  %v1846_v29 = vld [vmem:[#allocation4 + $0x138] sm:$0xff]  ;;  %v1832_v30 = vld [vmem:[#allocation4 + $0xc8] sm:$0xff] }
  0x40   :  { %511 = vmatpush.bf16.msrb.mxu0 %v1346_v25  ;;  %537 = vmatpush.bf16.msrb.mxu2 %v1354_v26  ;;  %v1833_v25 = vld [vmem:[#allocation4 + $0xd0] sm:$0xff]  ;;  %v1824_v26 = vld [vmem:[#allocation4 + $0x88] sm:$0xff]  ;;  %v1823_v31 = vld [vmem:[#allocation4 + $0x80] sm:$0xff] }
  0x41   :  { %550 = vmatpush.bf16.msrb.mxu3 %v1358_v28  ;;  %v1807_v28 = vld [vmem:[#allocation4] sm:$0xff]  ;;  %v1854_v33 = vld [vmem:[#allocation4 + $0x178] sm:$0xff]  ;;  %v1845_v34 = vld [vmem:[#allocation4 + $0x130] sm:$0xff] }
  0x42   :  { %524 = vmatpush.bf16.msrb.mxu1 %v1350_v32  ;;  %v1815_v32 = vld [vmem:[#allocation4 + $0x40] sm:$0xff]  ;;  %v1853_v36 = vld [vmem:[#allocation4 + $0x170] sm:$0xff]  ;;  %v1844_v39 = vld [vmem:[#allocation4 + $0x128] sm:$0xff] }
  0x43   :  { %v1831_v35 = vld [vmem:[#allocation4 + $0xc0] sm:$0xff]  ;;  %v1861_v41 = vld [vmem:[#allocation4 + $0x1b0] sm:$0xff]  ;;  %v1860_v45 = vld [vmem:[#allocation4 + $0x1a8] sm:$0xff] }
  0x44   :  { %512 = vmatpush.bf16.msrb.mxu0 %v1314_v37  ;;  %538 = vmatpush.bf16.msrb.mxu2 %v1322_v38  ;;  %v1862_v37 = vld [vmem:[#allocation4 + $0x1b8] sm:$0xff]  ;;  %v1869_v42 = vld [vmem:[#allocation4 + $0x1f0] sm:$0xff]  ;;  %v1843_v43 = vld [vmem:[#allocation4 + $0x120] sm:$0xff] }
  0x45   :  { %551 = vmatpush.bf16.msrb.mxu3 %v1326_v40  ;;  %v1870_v38 = vld [vmem:[#allocation4 + $0x1f8] sm:$0xff]  ;;  %v1852_v40 = vld [vmem:[#allocation4 + $0x168] sm:$0xff]  ;;  %v1841_v51 = vld [vmem:[#allocation4 + $0x110] sm:$0xff] }
  0x46   :  { %525 = vmatpush.bf16.msrb.mxu1 %v1318_v44  ;;  %v1851_v44 = vld [vmem:[#allocation4 + $0x160] sm:$0xff]  ;;  %v1868_v46 = vld [vmem:[#allocation4 + $0x1e8] sm:$0xff]  ;;  %v1842_v47 = vld [vmem:[#allocation4 + $0x118] sm:$0xff] }
  0x47   :  { %v1850_v48 = vld [vmem:[#allocation4 + $0x158] sm:$0xff]  ;;  %v1840_v56 = vld [vmem:[#allocation4 + $0x108] sm:$0xff]  ;;  %v1857_v60 = vld [vmem:[#allocation4 + $0x190] sm:$0xff] }
  0x48   :  { %513 = vmatpush.bf16.msrb.mxu0 %v1282_v49  ;;  %539 = vmatpush.bf16.msrb.mxu2 %v1290_v50  ;;  %v1859_v49 = vld [vmem:[#allocation4 + $0x1a0] sm:$0xff]  ;;  %v1858_v54 = vld [vmem:[#allocation4 + $0x198] sm:$0xff]  ;;  %v1848_v59 = vld [vmem:[#allocation4 + $0x148] sm:$0xff] }
  0x49   :  { %552 = vmatpush.bf16.msrb.mxu3 %v1294_v53  ;;  %v1867_v50 = vld [vmem:[#allocation4 + $0x1e0] sm:$0xff]  ;;  %v1849_v53 = vld [vmem:[#allocation4 + $0x150] sm:$0xff]  ;;  %v1866_v55 = vld [vmem:[#allocation4 + $0x1d8] sm:$0xff] }
  0x4a   :  { %526 = vmatpush.bf16.msrb.mxu1 %v1286_v57  ;;  %v1992_v57 = vld [vmem:[%s2012_s2] sm:$0xff]  ;;  %v1865_v61 = vld [vmem:[#allocation4 + $0x1d0] sm:$0xff] }
  0x4b   :  { %v119_v58 = vperm.slane %v1992_v57, 0 }
  0x4c   :  { %514 = vmatpush.bf16.msrb.mxu0 %v1250_v62  ;;  %540 = vmatpush.bf16.msrb.mxu2 %v1258_v63  ;;  %v120_v62 = vperm.slane %v1992_v57, 1  ;;  %v1839_v63 = vld [vmem:[#allocation4 + $0x100] sm:$0xff] }
  0x4d   :  { %553 = vmatpush.bf16.msrb.mxu3 %v1262_v0 }
  0x4e   :  { %527 = vmatpush.bf16.msrb.mxu1 %v1254_v2  ;;  %v1847_v2 = vld [vmem:[#allocation4 + $0x140] sm:$0xff] }
  0x4f   :  { %515 = vmatmul.bf16.vlgmr.msrb.gmra.mxu0 %v1979_v52  ;;  %541 = vmatmul.bf16.vlgmr.msrb.gmra.mxu2 %v1979_v52 }
  0x50   :  { %1091 = vmatpush.bf16.msra.mxu0 %v1814_v1  ;;  %1117 = vmatpush.bf16.msra.mxu2 %v1830_v3  ;;  %v1856_v3 = vld [vmem:[#allocation4 + $0x188] sm:$0xff] }
  0x51   :  { %554 = vmatmul.bf16.vlgmr.msrb.gmra.mxu3 %v1979_v52  ;;  %528 = vmatmul.bf16.vlgmr.msrb.gmra.mxu1 %v1979_v52  ;;  %v1835_v52 = vld [vmem:[#allocation4 + $0xe0] sm:$0xff] }
  0x52   :  { %1104 = vmatpush.bf16.msra.mxu1 %v1822_v4  ;;  %1130 = vmatpush.bf16.msra.mxu3 %v1838_v6  ;;  %v1864_v4 = vld [vmem:[#allocation4 + $0x1c8] sm:$0xff] }
  0x54   :  { %1092 = vmatpush.bf16.msra.mxu0 %v1813_v5  ;;  %1118 = vmatpush.bf16.msra.mxu2 %v1829_v7  ;;  %v121_v5 = vperm.slane %v1992_v57, 2 }
  0x56   :  { %1105 = vmatpush.bf16.msra.mxu1 %v1821_v8  ;;  %1131 = vmatpush.bf16.msra.mxu3 %v1837_v10  ;;  %v122_v8 = vperm.slane %v1992_v57, 3 }
  0x58   :  { %1093 = vmatpush.bf16.msra.mxu0 %v1812_v9  ;;  %1119 = vmatpush.bf16.msra.mxu2 %v1828_v11 }
  0x5a   :  { %1106 = vmatpush.bf16.msra.mxu1 %v1820_v12  ;;  %1132 = vmatpush.bf16.msra.mxu3 %v1836_v14  ;;  %v1863_v14 = vld [vmem:[#allocation4 + $0x1c0] sm:$0xff] }
  0x5c   :  { %1094 = vmatpush.bf16.msra.mxu0 %v1811_v13  ;;  %1120 = vmatpush.bf16.msra.mxu2 %v1827_v15  ;;  %v1855_v13 = vld [vmem:[#allocation4 + $0x180] sm:$0xff] }
  0x5e   :  { %1107 = vmatpush.bf16.msra.mxu1 %v1819_v16  ;;  %1133 = vmatpush.bf16.msra.mxu3 %v1835_v52 }
  0x60   :  { %1095 = vmatpush.bf16.msra.mxu0 %v1810_v17  ;;  %1121 = vmatpush.bf16.msra.mxu2 %v1826_v18 }
  0x62   :  { %1108 = vmatpush.bf16.msra.mxu1 %v1818_v19  ;;  %1134 = vmatpush.bf16.msra.mxu3 %v1834_v21 }
  0x64   :  { %1096 = vmatpush.bf16.msra.mxu0 %v1809_v20  ;;  %1122 = vmatpush.bf16.msra.mxu2 %v1825_v22 }
  0x66   :  { %1109 = vmatpush.bf16.msra.mxu1 %v1817_v23  ;;  %1135 = vmatpush.bf16.msra.mxu3 %v1833_v25 }
  0x68   :  { %1097 = vmatpush.bf16.msra.mxu0 %v1808_v24  ;;  %1123 = vmatpush.bf16.msra.mxu2 %v1824_v26  ;;  %v123_v26 = vperm.slane %v1992_v57, 4 }
  0x6a   :  { %1110 = vmatpush.bf16.msra.mxu1 %v1816_v27  ;;  %1136 = vmatpush.bf16.msra.mxu3 %v1832_v30  ;;  %v124_v27 = vperm.slane %v1992_v57, 5 }
  0x6c   :  { %1098 = vmatpush.bf16.msra.mxu0 %v1807_v28  ;;  %1124 = vmatpush.bf16.msra.mxu2 %v1823_v31 }
  0x6e   :  { %1111 = vmatpush.bf16.msra.mxu1 %v1815_v32  ;;  %1137 = vmatpush.bf16.msra.mxu3 %v1831_v35 }
  0x70   :  { %1143 = vmatpush.bf16.msrb.mxu0 %v1846_v29  ;;  %1169 = vmatpush.bf16.msrb.mxu2 %v1862_v37 }
  0x72   :  { %1156 = vmatpush.bf16.msrb.mxu1 %v1854_v33  ;;  %1182 = vmatpush.bf16.msrb.mxu3 %v1870_v38  ;;  %v125_v33 = vperm.slane %v1992_v57, 6 }
  0x74   :  { %1144 = vmatpush.bf16.msrb.mxu0 %v1845_v34  ;;  %1170 = vmatpush.bf16.msrb.mxu2 %v1861_v41  ;;  %v126_v34 = vperm.slane %v1992_v57, 7  ;;  %v1877_v57 = vld [vmem:[%s2014_s4] ss:$0 sm:$0xff] }
  0x76   :  { %1157 = vmatpush.bf16.msrb.mxu1 %v1853_v36  ;;  %1183 = vmatpush.bf16.msrb.mxu3 %v1869_v42 }
  0x78   :  { %1145 = vmatpush.bf16.msrb.mxu0 %v1844_v39  ;;  %1171 = vmatpush.bf16.msrb.mxu2 %v1860_v45 }
  0x7a   :  { %1158 = vmatpush.bf16.msrb.mxu1 %v1852_v40  ;;  %1184 = vmatpush.bf16.msrb.mxu3 %v1868_v46 }
  0x7c   :  { %1146 = vmatpush.bf16.msrb.mxu0 %v1843_v43  ;;  %1172 = vmatpush.bf16.msrb.mxu2 %v1859_v49 }
  0x7e   :  { %1159 = vmatpush.bf16.msrb.mxu1 %v1851_v44  ;;  %1185 = vmatpush.bf16.msrb.mxu3 %v1867_v50 }
  0x80   :  { %1147 = vmatpush.bf16.msrb.mxu0 %v1842_v47  ;;  %1173 = vmatpush.bf16.msrb.mxu2 %v1858_v54 }
  0x82   :  { %1160 = vmatpush.bf16.msrb.mxu1 %v1850_v48  ;;  %1186 = vmatpush.bf16.msrb.mxu3 %v1866_v55 }
  0x84   :  { %1148 = vmatpush.bf16.msrb.mxu0 %v1841_v51  ;;  %1174 = vmatpush.bf16.msrb.mxu2 %v1857_v60 }
  0x86   :  { %1161 = vmatpush.bf16.msrb.mxu1 %v1849_v53  ;;  %1187 = vmatpush.bf16.msrb.mxu3 %v1865_v61 }
  0x88   :  { %1149 = vmatpush.bf16.msrb.mxu0 %v1840_v56  ;;  %1175 = vmatpush.bf16.msrb.mxu2 %v1856_v3 }
  0x8a   :  { %1162 = vmatpush.bf16.msrb.mxu1 %v1848_v59  ;;  %1188 = vmatpush.bf16.msrb.mxu3 %v1864_v4 }
  0x8c   :  { %1150 = vmatpush.bf16.msrb.mxu0 %v1839_v63  ;;  %1176 = vmatpush.bf16.msrb.mxu2 %v1855_v13 }
  0x8e   :  { %1163 = vmatpush.bf16.msrb.mxu1 %v1847_v2  ;;  %1189 = vmatpush.bf16.msrb.mxu3 %v1863_v14  ;;  %v1195_v2 = vlaneseq }
  0xac   :  { %v464_v0 = vpop.f32.mrf.mxu0 }
  0xad   :  { %v465_v1 = vadd.f32 %v464_v0, %v119_v58 }
  0xae   :  { %v477_v6 = vpop.f32.mrf.mxu1 }
  0xaf   :  { %v559_v7 = vmax.f32 %v465_v1, 0.0  ;;  %v478_v9 = vadd.f32 %v477_v6, %v120_v62  ;;  %v1196_v6 = vand.u32 127, %v1195_v2 }
  0xb1   :  { %v567_v11 = vpack.c.bf16 %v559_v7, %v559_v7  ;;  %v560_v12 = vmax.f32 %v478_v9, 0.0  ;;  %vm1221_vm0 = vcmp.eq.s32.totalorder %v1196_v6, 4  ;;  %vm1197_vm1 = vcmp.lt.s32.totalorder %v1196_v6, 4 }
  0xb2   :  { %v490_v10 = vpop.f32.mrf.mxu2 }
  0xb3   :  { %v491_v15 = vadd.f32 %v490_v10, %v121_v5  ;;  %v568_v52 = vpack.c.bf16 %v560_v12, %v560_v12  ;;  %1099 = vmatmul.bf16.vlgmr.msra.gmra.mxu0 %v567_v11 }
  0xb4   :  { %v466_v19 = vpop.f32.mrf.mxu0 }
  0xb5   :  { %v503_v16 = vpop.f32.mrf.mxu3  ;;  %v561_v18 = vmax.f32 %v491_v15, 0.0  ;;  %1112 = vmatmul.bf16.vlgmr.msra.gmra.mxu1 %v568_v52 }
  0xb6   :  { %v504_v17 = vadd.f32 %v503_v16, %v122_v8  ;;  %v479_v22 = vpop.f32.mrf.mxu1 }
  0xb7   :  { %v569_v21 = vpack.c.bf16 %v561_v18, %v561_v18 }
  0xb8   :  { %v562_v20 = vmax.f32 %v504_v17, 0.0 }
  0xb9   :  { %1125 = vmatmul.bf16.vlgmr.msra.gmra.mxu2 %v569_v21 }
  0xba   :  { %v570_v23 = vpack.c.bf16 %v562_v20, %v562_v20  ;;  %v492_v24 = vpop.f32.mrf.mxu2 }
  0xbc   :  { %1138 = vmatmul.bf16.vlgmr.msra.gmra.mxu3 %v570_v23 }
  0xbd   :  { %v505_v25 = vpop.f32.mrf.mxu3 }
  0xcc   :  { %v516_v28 = vpop.f32.mrf.mxu0 }
  0xcd   :  { %v517_v29 = vadd.f32 %v516_v28, %v123_v26 }
  0xce   :  { %v529_v30 = vpop.f32.mrf.mxu1 }
  0xcf   :  { %v563_v31 = vmax.f32 %v517_v29, 0.0  ;;  %v530_v32 = vadd.f32 %v529_v30, %v124_v27 }
  0xd1   :  { %v571_v35 = vpack.c.bf16 %v563_v31, %v563_v31  ;;  %v564_v36 = vmax.f32 %v530_v32, 0.0 }
  0xd2   :  { %v542_v37 = vpop.f32.mrf.mxu2 }
  0xd3   :  { %v572_v38 = vpack.c.bf16 %v564_v36, %v564_v36  ;;  %v543_v39 = vadd.f32 %v542_v37, %v125_v33  ;;  %1151 = vmatmul.bf16.vlgmr.msrb.gmra.mxu0 %v571_v35 }
  0xd4   :  { %v555_v40 = vpop.f32.mrf.mxu3  ;;  %v518_v42 = vpop.f32.mrf.mxu0 }
  0xd5   :  { %v556_v41 = vadd.f32 %v555_v40, %v126_v34  ;;  %v565_v43 = vmax.f32 %v543_v39, 0.0  ;;  %1164 = vmatmul.bf16.vlgmr.msrb.gmra.mxu1 %v572_v38 }
  0xd6   :  { %v531_v45 = vpop.f32.mrf.mxu1 }
  0xd7   :  { %v566_v44 = vmax.f32 %v556_v41, 0.0  ;;  %v573_v46 = vpack.c.bf16 %v565_v43, %v565_v43 }
  0xd9   :  { %v574_v47 = vpack.c.bf16 %v566_v44, %v566_v44  ;;  %1177 = vmatmul.bf16.vlgmr.msrb.gmra.mxu2 %v573_v46 }
  0xda   :  { %v544_v48 = vpop.f32.mrf.mxu2 }
  0xdb   :  { %1190 = vmatmul.bf16.vlgmr.msrb.gmra.mxu3 %v574_v47 }
  0xdc   :  { %v557_v49 = vpop.f32.mrf.mxu3 }
 0x130   :  { %v1100_v50 = vpop.f32.mrf.mxu0 }
 0x131   :  { %v1101_v58 = vadd.f32 %v1877_v57, %v1100_v50 }
 0x132   :  { %v1113_v51 = vpop.f32.mrf.mxu1 }
 0x133   :  { %v1114_v61 = vadd.f32 %v1113_v51, %v1101_v58 }
 0x138   :  { %v1102_v53 = vpop.f32.mrf.mxu0 }
 0x13a   :  { %v1115_v54 = vpop.f32.mrf.mxu1 }
 0x13c   :  { %v1126_v55 = vpop.f32.mrf.mxu2 }
 0x13d   :  { %v1127_v62 = vadd.f32 %v1126_v55, %v1114_v61 }
 0x13f   :  { %v1139_v56 = vpop.f32.mrf.mxu3 }
 0x140   :  { %v1140_v1 = vadd.f32 %v1139_v56, %v1127_v62 }
 0x144   :  { %v1128_v59 = vpop.f32.mrf.mxu2 }
 0x147   :  { %v1141_v60 = vpop.f32.mrf.mxu3 }
 0x150   :  { %v1152_v63 = vpop.f32.mrf.mxu0 }
 0x151   :  { %v1153_v3 = vadd.f32 %v1152_v63, %v1140_v1 }
 0x152   :  { %v1165_v0 = vpop.f32.mrf.mxu1 }
 0x153   :  { %v1166_v7 = vadd.f32 %v1165_v0, %v1153_v3 }
 0x158   :  { %v1154_v4 = vpop.f32.mrf.mxu0 }
 0x15a   :  { %v1167_v5 = vpop.f32.mrf.mxu1 }
 0x15c   :  { %v1178_v8 = vpop.f32.mrf.mxu2 }
 0x15d   :  { %v1179_v9 = vadd.f32 %v1178_v8, %v1166_v7 }
 0x15e   :  { %v1191_v10 = vpop.f32.mrf.mxu3 }
 0x15f   :  { %v1192_v11 = vadd.f32 %v1191_v10, %v1179_v9 }
 0x161   :  { %v1222_v12 = vsel %vm1221_vm0, %v1192_v11, 0.0  ;;  %v1198_v13 = vsel %vm1197_vm1, %v1192_v11, -1e+30 }
 0x162   :  { %1199 = vmax.xlane.f32.xlu0 %v1198_v13 }
 0x164   :  { %v1180_v14 = vpop.f32.mrf.mxu2 }
 0x166   :  { %v1193_v15 = vpop.f32.mrf.mxu3 }
 0x1d5   :  { %v1200_v16 = vpop.xlane.xlu0 %1199 }
 0x1d6   :  { %v1201_v17 = vsub.f32 %v1198_v13, %v1200_v16 }
 0x1d8   :  { %v1202_v52 = vmul.f32 1.442695, %v1201_v17 }
 0x1da   :  { %1878 = vpow2.f32 %v1202_v52 }
 0x1e0   :  { %v1879_v18 = vpop.eup %1878 }
 0x1e1   :  { %1204 = vadd.xlane.f32.xlu0 %v1879_v18 }
 0x254   :  { %v1205_v19 = vpop.xlane.xlu0 %1204 }
 0x255   :  { %1880 = vrcp.f32 %v1205_v19  ;;  %v1217_v23 = vand.u32 2147483648, %v1205_v19  ;;  %v1215_v25 = vand.u32 2147483647, %v1205_v19  ;;  %vm1211_vm3 = vweird.f32 %v1205_v19 }
 0x257   :  { %v1218_v27 = vor.u32 1.1754944e-38, %v1217_v23  ;;  %vm1216_vm5 = vcmp.eq.f32.partialorder %v1215_v25, 8.507059e+37 }
 0x25b   :  { %v1881_v20 = vpop.eup %1880 }
 0x25c   :  { %v1207_v21 = vmul.f32 %v1881_v20, %v1205_v19  ;;  %vm1212_vm2 = vweird.f32 %v1881_v20 }
 0x25d   :  { %vm1213_vm4 = vmor %vm1211_vm3, %vm1212_vm2 }
 0x25e   :  { %v1208_v22 = vsub.f32 1.0, %v1207_v21 }
 0x260   :  { %v1209_v24 = vmul.f32 %v1881_v20, %v1208_v22 }
 0x262   :  { %v1210_v26 = vadd.f32 %v1881_v20, %v1209_v24 }
 0x264   :  { %v1214_v28 = vsel %vm1213_vm4, %v1881_v20, %v1210_v26 }
 0x265   :  { %v1219_v29 = vsel %vm1216_vm5, %v1218_v27, %v1214_v28 }
 0x266   :  { %v1220_v30 = vmul.f32 %v1879_v18, %v1219_v29 }
 0x268   :  { %v1223_v31 = vsel %vm1197_vm1, %v1220_v30, %v1222_v12 }
 0x269   :  { %1224 = vst [vmem:[%s2015_s5] sm:$0xff] %v1223_v31 }
 0x26a   :  { %1229 = vsyncpa [#allocation3], 1 }
 0x26b   :  { %1230 = vsyncpa [#allocation5], 1 }

</bundles_post_ra>
